<compile_context>
chip_gen: v5e
topology: v5e:2x2
jax: 0.10.0
libtpu: 0.0.40
codegen_flags: <defaults>
</compile_context>

<pallas_src>
import functools

import jax
import jax.numpy as jnp
import numpy as np
from jax.experimental import pallas as pl
from jax.experimental.pallas import tpu as pltpu

BN_EPS = 1e-5  # PyTorch BatchNorm2d default eps.


@functools.lru_cache(maxsize=None)
def _vmem_limits():
    """(vmem_limit_bytes, per-step working-set budget) derived per TPU generation."""
    try:
        cap = int(pltpu.get_tpu_info().vmem_capacity_bytes)
    except Exception:  # conservative fallback if the query is unavailable
        cap = 128 * 1024 * 1024
    # ~48 MiB on v7x (64 MiB physical / TC), ~96 MiB on v5e/v6e (128 MiB physical).
    limit = min((cap * 3) // 4, 100 * 1024 * 1024)
    budget = (limit * 4) // 5  # 20% headroom for compiler internals / semaphores
    return limit, budget


def _pick_tile_h(n, cin, cout, h, w, out_itemsize, vmem_budget_bytes, min_steps=4):
    """Largest H-tile that (a) divides H, (b) keeps tile_h*W a multiple of 128 so both
    the flattened input block and the 4x output block are lane-aligned (unmasked vst),
    (c) fits the per-step VMEM budget, and (d) leaves >= min_steps grid steps for
    pipelining / v7x megacore sharding when possible."""
    candidates = [th for th in range(1, h + 1)
                  if h % th == 0 and (th * w) % 128 == 0]
    if not candidates:
        # No lane-aligned tile exists (e.g. 20x20 level): fall back to full-H blocks
        # (block == full array dims is always legal).  These levels are tiny and
        # per-call-overhead bound; stores may be masked — acceptable degradation.
        return h

    def working_set(th):
        p = th * w
        in_bytes = 2 * cin * p * 4                        # double-buffered input block
        out_bytes = 2 * cout * 4 * p * out_itemsize       # double-buffered output block
        lanes = max(cout, 128)                            # lane padding of intermediates
        tmp_bytes = 4 * (4 * p) * lanes * 4               # conv result + dup chain + transpose (f32)
        return in_bytes + out_bytes + tmp_bytes

    fitting = [th for th in candidates if working_set(th) <= vmem_budget_bytes]
    if not fitting:
        return min(candidates)
    pipelined = [th for th in fitting if n * (h // th) >= min_steps]
    return max(pipelined) if pipelined else max(fitting)


def _upsample_kernel(x_ref, w_ref, b_ref, eye_ref, o_ref, *, tile_h, src_w,
                     negative_slope):
    # x_ref:   (1, Cin, P)      P = tile_h * src_w (flattened input rows of this tile)
    # w_ref:   (Cin, Cout)      1x1 conv weight with BN scale folded in (f32)
    # b_ref:   (1, Cout)        folded BN bias (f32)
    # eye_ref: (Cout, Cout)     identity, hoisted out of the per-step body (constant
    #                           index_map -> resident in VMEM, fetched once)
    # o_ref:   (1, Cout, 4*P)   NCHW output tile, spatial flattened (2*tile_h, 2*src_w)
    p = x_ref.shape[2]
    cout = w_ref.shape[1]

    x = x_ref[0].astype(jnp.float32)          # (Cin, P)
    wk = w_ref[...].astype(jnp.float32)       # (Cin, Cout)

    # 1x1 conv (+ folded BN scale): contract Cin (A^T @ B), so the result lands
    # spatial-on-sublanes / channels-on-lanes and the upsample reshapes below never
    # touch the lane dim.
    y = jax.lax.dot_general(x, wk, (((0,), (0,)), ((), ())),
                            preferred_element_type=jnp.float32)   # (P, Cout)

    # BN bias + LeakyReLU (negative_slope is a static Python float).
    y = y + b_ref[...]
    if negative_slope == 0.0:
        y = jnp.maximum(y, 0.0)
    else:
        y = jnp.maximum(y, y * negative_slope)

    # Nearest-neighbor 2x upsample via broadcast + reshape (last dim = Cout untouched,
    # so every reshape is layout-cheap).
    y = y.reshape(tile_h, src_w, cout)
    y = jnp.broadcast_to(y[:, :, None, :], (tile_h, src_w, 2, cout))
    y = y.reshape(tile_h, 2 * src_w, cout)                     # columns -> 2j+s
    y = jnp.broadcast_to(y[:, None, :, :], (tile_h, 2, 2 * src_w, cout))
    y = y.reshape(4 * p, cout)                                 # rows -> 2i+r (flattened)

    # Back to channel-major (NCHW) with an identity matmul on the otherwise-idle MXU:
    # out[c, q] = y[q, c].  Gives a single lane-dense store (last dim 4*P).
    # In the bf16-output path eye is bf16, so the transpose runs on the fast bf16 MXU
    # path and the (4P, Cout) operand is half-size; accumulation stays f32.
    y = y.astype(eye_ref.dtype)
    y_t = jax.lax.dot_general(eye_ref[...], y, (((1,), (1,)), ((), ())),
                              preferred_element_type=jnp.float32)   # (Cout, 4*P)

    o_ref[0] = y_t.astype(o_ref.dtype)


@functools.partial(jax.jit, static_argnames=("negative_slope", "out_dtype"))
def upsample_forward(x_nchw, w_oihw, gamma, beta, running_mean, running_var,
                     *, negative_slope=0.0, out_dtype=jnp.float32):
    """RetinaFace Upsample forward.  x_nchw: (N, Cin, H, W) f32 -> (N, Cout, 2H, 2W)."""
    n, cin, h, w = x_nchw.shape
    cout = w_oihw.shape[0]

    # Fold eval-mode BatchNorm into the conv weight and a per-channel bias (tiny, f32).
    scale = gamma / jnp.sqrt(running_var + BN_EPS)                       # (Cout,)
    bias = (beta - running_mean * scale).reshape(1, cout).astype(jnp.float32)
    w_folded = (w_oihw.reshape(cout, cin) * scale[:, None]).T.astype(jnp.float32)

    # Identity for the in-kernel MXU transpose; bf16 when the output is bf16 so the
    # transpose matmul runs in bf16 (f32 accumulate) and its operand is half-size.
    trans_dtype = jnp.bfloat16 if out_dtype == jnp.bfloat16 else jnp.float32
    eye = jnp.eye(cout, dtype=trans_dtype)

    vmem_limit, vmem_budget = _vmem_limits()
    out_itemsize = np.dtype(out_dtype).itemsize
    tile_h = _pick_tile_h(n, cin, cout, h, w, out_itemsize, vmem_budget)
    p = tile_h * w

    x_flat = x_nchw.reshape(n, cin, h * w)                               # free reshape

    kernel = functools.partial(_upsample_kernel, tile_h=tile_h, src_w=w,
                               negative_slope=float(negative_slope))
    out_flat = pl.pallas_call(
        kernel,
        out_shape=jax.ShapeDtypeStruct((n, cout, 4 * h * w), out_dtype),
        grid_spec=pltpu.PrefetchScalarGridSpec(
            num_scalar_prefetch=0,
            grid=(n, h // tile_h),
            in_specs=[
                pl.BlockSpec((1, cin, p), lambda b, i: (b, 0, i)),
                pl.BlockSpec((cin, cout), lambda b, i: (0, 0)),
                pl.BlockSpec((1, cout), lambda b, i: (0, 0)),
                pl.BlockSpec((cout, cout), lambda b, i: (0, 0)),
            ],
            out_specs=pl.BlockSpec((1, cout, 4 * p), lambda b, i: (b, 0, i)),
        ),
        compiler_params=pltpu.CompilerParams(
            dimension_semantics=("parallel", "parallel"),
            vmem_limit_bytes=vmem_limit,
        ),
    )(x_flat, w_folded, bias, eye)

    return out_flat.reshape(n, cout, 2 * h, 2 * w)                       # free reshape


def reference_forward(x_nchw, w_oc, gamma, beta, mean, var, negative_slope=0.0):
    """Plain-JAX reference of the PyTorch module (eval-mode BN)."""
    y = jnp.einsum("nchw,oc->nohw", x_nchw, w_oc)
    scale = gamma / jnp.sqrt(var + BN_EPS)
    bias = beta - mean * scale
    y = y * scale[None, :, None, None] + bias[None, :, None, None]
    y = jnp.where(y >= 0, y, y * negative_slope)
    y = jnp.repeat(jnp.repeat(y, 2, axis=2), 2, axis=3)
    return y


if __name__ == "__main__":
    # Small deterministic example consistent with the module's forward
    # (real RetinaFace uses Upsample(128, 64) / Upsample(64, 32)).
    N, Cin, Cout, H, W = 2, 4, 8, 16, 16

    key = jax.random.PRNGKey(0)
    kx, kw = jax.random.split(key)

    x = jax.random.normal(kx, (N, Cin, H, W), dtype=jnp.float32)

    # Conv2d(Cin, Cout, 1, bias=False) weight: (Cout, Cin, 1, 1) in PyTorch.
    w_oihw = jax.random.normal(kw, (Cout, Cin, 1, 1), dtype=jnp.float32) * 0.1

    # Deterministic BatchNorm2d parameters / running stats (inference semantics).
    gamma = 1.0 + 0.1 * jnp.arange(Cout, dtype=jnp.float32)
    beta = 0.05 * jnp.arange(Cout, dtype=jnp.float32)
    running_mean = 0.01 * jnp.arange(Cout, dtype=jnp.float32)
    running_var = 1.0 + 0.02 * jnp.arange(Cout, dtype=jnp.float32)

    ref = reference_forward(x, w_oihw.reshape(Cout, Cin), gamma, beta,
                            running_mean, running_var)

    # f32 path (matches the PyTorch module, tight tolerance).
    out = upsample_forward(x, w_oihw, gamma, beta, running_mean, running_var)
    out = jax.block_until_ready(out)
    np.testing.assert_allclose(np.asarray(out), np.asarray(ref), rtol=1e-4, atol=1e-5)
    assert out.shape == (N, Cout, 2 * H, 2 * W)
    assert out.dtype == jnp.float32

    # bf16 writeback path (f32 compute, bf16 store): cuts the dominant 4x output
    # HBM traffic in half for downstream consumers that tolerate bf16.
    out_bf16 = upsample_forward(x, w_oihw, gamma, beta, running_mean, running_var,
                                out_dtype=jnp.bfloat16)
    out_bf16 = jax.block_until_ready(out_bf16)
    assert out_bf16.dtype == jnp.bfloat16
    np.testing.assert_allclose(np.asarray(out_bf16.astype(jnp.float32)),
                               np.asarray(ref), rtol=2e-2, atol=2e-2)

    print("KERNEL_OK")
</pallas_src>

<mosaic_0001>
module attributes {stable_mosaic.version = 11 : i64} {
  func.func @_upsample_kernel(%arg0: i32, %arg1: i32, %arg2: memref<1x4x128xf32, #tpu.memory_space<vmem>>, %arg3: memref<4x8xf32, #tpu.memory_space<vmem>>, %arg4: memref<1x8xf32, #tpu.memory_space<vmem>>, %arg5: memref<8x8xf32, #tpu.memory_space<vmem>>, %arg6: memref<1x8x512xf32, #tpu.memory_space<vmem>>) attributes {dimension_semantics = [#tpu.dimension_semantics<parallel>, #tpu.dimension_semantics<parallel>], iteration_bounds = array<i64: 2, 2>, scalar_prefetch = 0 : i64, scratch_operands = 0 : i64, tpu.core_type = #tpu.core_type<tc>, window_params = [{transform_indices = @transform_0, window_bounds = array<i64: 1, 4, 128>}, {pipeline_mode = #tpu.pipeline_mode<synchronous>, transform_indices = @transform_1, window_bounds = array<i64: 4, 8>}, {pipeline_mode = #tpu.pipeline_mode<synchronous>, transform_indices = @transform_2, window_bounds = array<i64: 1, 8>}, {pipeline_mode = #tpu.pipeline_mode<synchronous>, transform_indices = @transform_3, window_bounds = array<i64: 8, 8>}, {transform_indices = @transform_4, window_bounds = array<i64: 1, 8, 512>}]} {
    %c0 = arith.constant 0 : index
    %c0_0 = arith.constant 0 : index
    %c0_1 = arith.constant 0 : index
    %0 = vector.load %arg2[%c0, %c0_0, %c0_1] : memref<1x4x128xf32, #tpu.memory_space<vmem>>, vector<1x4x128xf32>
    %1 = vector.shape_cast %0 : vector<1x4x128xf32> to vector<4x128xf32>
    %c0_2 = arith.constant 0 : index
    %c0_3 = arith.constant 0 : index
    %2 = vector.load %arg3[%c0_2, %c0_3] : memref<4x8xf32, #tpu.memory_space<vmem>>, vector<4x8xf32>
    %cst = arith.constant dense<0.000000e+00> : vector<128x8xf32>
    %3 = tpu.matmul %1, %2, %cst {dimension_numbers = #tpu.dot_dimension_numbers<[0], [0], [1], [1], [0, 1, 1, 1], [], []>} : vector<4x128xf32>, vector<4x8xf32>, vector<128x8xf32> -> vector<128x8xf32>
    %c0_4 = arith.constant 0 : index
    %c0_5 = arith.constant 0 : index
    %4 = vector.load %arg4[%c0_4, %c0_5] : memref<1x8xf32, #tpu.memory_space<vmem>>, vector<1x8xf32>
    %5 = vector.broadcast %4 : vector<1x8xf32> to vector<128x8xf32>
    %6 = arith.addf %3, %5 : vector<128x8xf32>
    %cst_6 = arith.constant 0.000000e+00 : f32
    %7 = vector.broadcast %cst_6 : f32 to vector<128x8xf32>
    %8 = arith.maximumf %6, %7 : vector<128x8xf32>
    %9 = vector.shape_cast %8 : vector<128x8xf32> to vector<8x16x8xf32>
    %10 = vector.shape_cast %9 : vector<8x16x8xf32> to vector<8x16x1x8xf32>
    %11 = vector.shape_cast %10 : vector<8x16x1x8xf32> to vector<8x16x1x8xf32>
    %12 = vector.broadcast %11 : vector<8x16x1x8xf32> to vector<8x16x2x8xf32>
    %13 = vector.shape_cast %12 : vector<8x16x2x8xf32> to vector<8x32x8xf32>
    %14 = vector.shape_cast %13 : vector<8x32x8xf32> to vector<8x1x32x8xf32>
    %15 = vector.shape_cast %14 : vector<8x1x32x8xf32> to vector<8x1x32x8xf32>
    %16 = vector.broadcast %15 : vector<8x1x32x8xf32> to vector<8x2x32x8xf32>
    %17 = vector.shape_cast %16 : vector<8x2x32x8xf32> to vector<512x8xf32>
    %c0_7 = arith.constant 0 : index
    %c0_8 = arith.constant 0 : index
    %18 = vector.load %arg5[%c0_7, %c0_8] : memref<8x8xf32, #tpu.memory_space<vmem>>, vector<8x8xf32>
    %cst_9 = arith.constant dense<0.000000e+00> : vector<8x512xf32>
    %19 = tpu.matmul %18, %17, %cst_9 {dimension_numbers = #tpu.dot_dimension_numbers<[1], [1], [0], [0], [0, 0, 1, 0], [], []>} : vector<8x8xf32>, vector<512x8xf32>, vector<8x512xf32> -> vector<8x512xf32>
    %c0_10 = arith.constant 0 : index
    %c0_11 = arith.constant 0 : index
    %c0_12 = arith.constant 0 : index
    %20 = vector.load %arg6[%c0_10, %c0_11, %c0_12] : memref<1x8x512xf32, #tpu.memory_space<vmem>>, vector<1x8x512xf32>
    %21 = vector.shape_cast %20 : vector<1x8x512xf32> to vector<8x512xf32>
    %22 = vector.shape_cast %19 : vector<8x512xf32> to vector<1x8x512xf32>
    tpu.vector_store %arg6[%c0_10, %c0_11, %c0_12], %22 {strides = array<i32>} : memref<1x8x512xf32, #tpu.memory_space<vmem>>, vector<1x8x512xf32>,
    return
  }
  func.func @transform_0(%arg0: i32, %arg1: i32) -> (i32, i32, i32) {
    %c0_i32 = arith.constant 0 : i32
    %c0_i32_0 = arith.constant 0 : i32
    return %arg0, %c0_i32, %arg1 : i32, i32, i32
  }
  func.func @transform_1(%arg0: i32, %arg1: i32) -> (i32, i32) {
    %c0_i32 = arith.constant 0 : i32
    %c0_i32_0 = arith.constant 0 : i32
    %c0_i32_1 = arith.constant 0 : i32
    return %c0_i32, %c0_i32_0 : i32, i32
  }
  func.func @transform_2(%arg0: i32, %arg1: i32) -> (i32, i32) {
    %c0_i32 = arith.constant 0 : i32
    %c0_i32_0 = arith.constant 0 : i32
    %c0_i32_1 = arith.constant 0 : i32
    return %c0_i32, %c0_i32_0 : i32, i32
  }
  func.func @transform_3(%arg0: i32, %arg1: i32) -> (i32, i32) {
    %c0_i32 = arith.constant 0 : i32
    %c0_i32_0 = arith.constant 0 : i32
    %c0_i32_1 = arith.constant 0 : i32
    return %c0_i32, %c0_i32_0 : i32, i32
  }
  func.func @transform_4(%arg0: i32, %arg1: i32) -> (i32, i32, i32) {
    %c0_i32 = arith.constant 0 : i32
    %c0_i32_0 = arith.constant 0 : i32
    return %arg0, %c0_i32, %arg1 : i32, i32, i32
  }
}

</mosaic_0001>

<bundles_post_ra>
// kernel: upsample_forward.1
= control target key start
LH: loop header
LB: loop body
LE: loop exit
PB: predicated region body
PF: predicated region fallthrough
CT: control target
= control target key end

     0   :  { %s1499_s15 = smov 0   ;;  %s1501_s16 = smov 0   ;;  %s1892_s0 = inlined_call_operand.vmem [shape: f32[2,4,256], index: 0, kind: input, shape index: {}]   ;;  %s1893_s1 = inlined_call_operand.vmem [shape: f32[4,8], index: 1, kind: input, shape index: {}]   ;;  %s1894_s2 = inlined_call_operand.vmem [shape: f32[1,8], index: 2, kind: input, shape index: {}]   ;;  %s1895_s3 = inlined_call_operand.vmem [shape: f32[8,8], index: 3, kind: input, shape index: {}]   ;;  %s1896_s4 = inlined_call_operand.vmem [shape: f32[2,8,1024], index: 4, kind: output, shape index: {}]  }
   0x1   :  { %s1503_s17 = smov 0   ;;  %s1505_s18 = smov 0  }
   0x2   :  { %s1507_s19 = smov 0  }
   0x3 LB: > { %s23_s20 = sadd.s32 1, %s1464_s17  ;;  %s26_s21 = sadd.s32 1, %s1468_s18  ;;  %s1472_s19 = sphi %s1507_s19, %s14_s19   ;;  %s1468_s18 = sphi %s1505_s18, %s1900_s18   ;;  %s1464_s17 = sphi %s1503_s17, %s1899_s17   ;;  %s1460_s16 = sphi %s1501_s16, %s1898_s16   ;;  %s1456_s15 = sphi %s1499_s15, %s1897_s15  }
   0x4   : > { %p24_p0 = scmp.ge.s32.totalorder %s23_s20, 2  ;;  %p1298_p1 = scmp.ge.s32.totalorder %s1472_s19, 1 }
   0x5   : > { %p181_p2 = scmp.lt.s32.totalorder %s1472_s19, 5 }
   0x6   : > { %s1902_s20 = smov (%p24_p0, %s23_s20), 0  ;;  %s1904_s21 = smov (!%p24_p0, %s26_s21), %s1468_s18 }
   0x7   : > { %p182_p3 = pnand %p1298_p1, %p181_p2  ;;  %p28_p4 = scmp.ge.s32.totalorder %s1904_s21, 2 }
   0x8   : > { %p214_p5 = scmp.lt.s32.totalorder (!%p182_p3), %s1460_s16, 1  ;;  %p216_p6 = scmp.lt.s32.totalorder (!%p182_p3), %s1456_s15, 1 }
   0x9   : > { %s1906_s21 = smov (%p28_p4, %s1904_s21), 0  ;;  %185 = sbr.rel (%p182_p3) target bundleno = 865 (0x361), region = 36 }
   0xa   : > { %s1301_s11 = sshll.u32 (!%p182_p3), %s1456_s15, 2 }
   0xb   : > { %p225_p7 = scmp.lt.s32.totalorder (!%p182_p3), %s1301_s11, 7 }
   0xe   : > { %v233_v0 = vld [vmem:[%s1893_s1] sm:$0xf]  ;;  %vm319_vm0 = vcmask 1043456   ;;  %s1908_s16 = smov (!%p214_p5, %s1460_s16), 1  ;;  %vm270_vm1 = vcmask 31744   ;;  %vm988_vm2 = vcmask 64512  }
   0xf   : > { %1304 = vmatpush.msk.msra.mxu0 %vm319_vm0, %v233_v0  ;;  %s217_s24 = scalar_select %p216_p6, %s1456_s15, 1  ;;  %v1555_v12 = vld [vmem:[%s1894_s2] ss:$0 sm:$0xff] }
  0x10   : > { %s1299_s25 = sshll.u32 %s1908_s16, 1  ;;  %s1910_s11 = smov (!%p225_p7, %s1301_s11), 7 }
  0x11   : > { %s219_s26 = sadd.s32 %s1299_s25, %s217_s24  ;;  %s1302_s12 = sshll.u32 %s1908_s16, 3 }
  0x12   : > { %s1300_s27 = sshll.u32 %s219_s26, 2  ;;  %s228_s13 = sadd.s32 %s1302_s12, %s1910_s11 }
  0x13   : > { %s221_s30 = scalar_lea.vmem %s1892_s0, %s1300_s27  ;;  %s1303_s14 = sshll.u32 %s228_s13, 3 }
  0x14   : > { %v232_v1 = vld [vmem:[%s221_s30] sm:$0xf]  ;;  %s230_s24 = scalar_lea.vmem %s1896_s4, %s1303_s14 }
  0x15   : > { %238 = vxpose.xlu0.b32.start.end [1/1] (short) %v232_v1, 128 }
  0xb9   : > { %v254_v2 = vpop.trf.xlu0 }
  0xba   : > { %1305 = vmatmul.msk.f32.vlgmr.msra.gmra.mxu0 %vm270_vm1, %v254_v2 }
  0xc1   : > { %v255_v3 = vpop.trf.xlu0 }
  0xc2   : > { %1306 = vmatmul.msk.f32.gmra.mxu0 %vm270_vm1, %v255_v3 }
  0xc9   : > { %v256_v4 = vpop.trf.xlu0 }
  0xca   : > { %1307 = vmatmul.msk.f32.gmra.mxu0 %vm270_vm1, %v256_v4 }
  0xd1   : > { %v257_v5 = vpop.trf.xlu0 }
  0xd2   : > { %1308 = vmatmul.msk.f32.gmra.mxu0 %vm270_vm1, %v257_v5 }
  0xd9   : > { %v258_v6 = vpop.trf.xlu0 }
  0xda   : > { %1309 = vmatmul.msk.f32.gmra.mxu0 %vm270_vm1, %v258_v6 }
  0xe1   : > { %v259_v7 = vpop.trf.xlu0 }
  0xe2   : > { %1310 = vmatmul.msk.f32.gmra.mxu0 %vm270_vm1, %v259_v7 }
  0xe9   : > { %v260_v8 = vpop.trf.xlu0 }
  0xea   : > { %1311 = vmatmul.msk.f32.gmra.mxu0 %vm270_vm1, %v260_v8 }
  0xf1   : > { %v261_v9 = vpop.trf.xlu0 }
  0xf2   : > { %1312 = vmatmul.msk.f32.gmra.mxu0 %vm270_vm1, %v261_v9 }
  0xf9   : > { %v262_v10 = vpop.trf.xlu0 }
  0xfa   : > { %1313 = vmatmul.msk.f32.gmra.mxu0 %vm270_vm1, %v262_v10 }
 0x101   : > { %v263_v11 = vpop.trf.xlu0 }
 0x102   : > { %1314 = vmatmul.msk.f32.gmra.mxu0 %vm270_vm1, %v263_v11 }
 0x109   : > { %v264_v48 = vpop.trf.xlu0 }
 0x10a   : > { %1315 = vmatmul.msk.f32.gmra.mxu0 %vm270_vm1, %v264_v48 }
 0x111   : > { %v265_v56 = vpop.trf.xlu0 }
 0x112   : > { %1316 = vmatmul.msk.f32.gmra.mxu0 %vm270_vm1, %v265_v56 }
 0x137   : > { %v340_v13 = vpop.f32.mrf.mxu0 }
 0x138   : > { %v341_v14 = vadd.f32 %v1555_v12, %v340_v13 }
 0x13a   : > { %v388_v15 = vmax.f32 %v341_v14, 0.0 }
 0x13c   : > { %v420_v16 = vrot.slane %v388_v15, 1  ;;  %v421_v17 = vrot.slane %v388_v15, 2  ;;  %v422_v18 = vrot.slane %v388_v15, 3  ;;  %v423_v19 = vrot.slane %v388_v15, 4 }
 0x13d   : > { %v424_v20 = vrot.slane %v388_v15, 5  ;;  %v425_v21 = vrot.slane %v388_v15, 6  ;;  %v532_v22 = vperm.slane %v388_v15, 0  ;;  %v426_v23 = vrot.slane %v388_v15, 7 }
 0x13e   : > { %v533_v24 = vperm.slane %v420_v16, 0  ;;  %v534_v25 = vperm.slane %v421_v17, 0  ;;  %v535_v26 = vperm.slane %v422_v18, 0  ;;  %v536_v27 = vperm.slane %v423_v19, 0 }
 0x13f   : > { %661 = vst [vmem:[#allocation1] ss:$4 sm:$0xff] %v532_v22  ;;  %v343_v28 = vpop.f32.mrf.mxu0  ;;  %v537_v29 = vperm.slane %v424_v20, 0  ;;  %v538_v31 = vperm.slane %v425_v21, 0  ;;  %v539_v32 = vperm.slane %v426_v23, 0 }
 0x140   : > { %663 = vst [vmem:[#allocation1 + $0x1] ss:$4 sm:$0xff] %v533_v24  ;;  %v344_v30 = vadd.f32 %v1555_v12, %v343_v28 }
 0x141   : > { %665 = vst [vmem:[#allocation1 + $0x2] ss:$4 sm:$0xff] %v534_v25 }
 0x142   : > { %667 = vst [vmem:[#allocation1 + $0x3] ss:$4 sm:$0xff] %v535_v26  ;;  %v389_v33 = vmax.f32 %v344_v30, 0.0 }
 0x143   : > { %669 = vst [vmem:[#allocation1 + $0x20] ss:$4 sm:$0xff] %v536_v27 }
 0x144   : > { %671 = vst [vmem:[#allocation1 + $0x21] ss:$4 sm:$0xff] %v537_v29  ;;  %v427_v34 = vrot.slane %v389_v33, 1  ;;  %v428_v35 = vrot.slane %v389_v33, 2  ;;  %v429_v36 = vrot.slane %v389_v33, 3  ;;  %v430_v37 = vrot.slane %v389_v33, 4 }
 0x145   : > { %673 = vst [vmem:[#allocation1 + $0x22] ss:$4 sm:$0xff] %v538_v31  ;;  %v431_v38 = vrot.slane %v389_v33, 5  ;;  %v432_v40 = vrot.slane %v389_v33, 6  ;;  %v540_v41 = vperm.slane %v389_v33, 0  ;;  %v433_v44 = vrot.slane %v389_v33, 7 }
 0x146   : > { %675 = vst [vmem:[#allocation1 + $0x23] ss:$4 sm:$0xff] %v539_v32  ;;  %v541_v39 = vperm.slane %v427_v34, 0  ;;  %v542_v42 = vperm.slane %v428_v35, 0  ;;  %v543_v45 = vperm.slane %v429_v36, 0  ;;  %v544_v46 = vperm.slane %v430_v37, 0 }
 0x147   : > { %v545_v47 = vperm.slane %v431_v38, 0  ;;  %v546_v49 = vperm.slane %v432_v40, 0  ;;  %v547_v51 = vperm.slane %v433_v44, 0  ;;  %v346_v54 = vpop.f32.mrf.mxu0 }
 0x148   : > { %v347_v55 = vadd.f32 %v1555_v12, %v346_v54 }
 0x149   : > { %v1559_v43 = vld.sshfl [vmem:[#allocation1] sm:$0xff pattern:$0x73625140] }
 0x14a   : > { %678 = vst [vmem:[#allocation1] ss:$4 sm:$0xff] %v540_v41  ;;  %v1572_v58 = vmax.f32 %v347_v55, 0.0 }
 0x14b   : > { %679 = vst [vmem:[#allocation1 + $0x1] ss:$4 sm:$0xff] %v541_v39 }
 0x14c   : > { %680 = vst [vmem:[#allocation1 + $0x2] ss:$4 sm:$0xff] %v542_v42  ;;  %v434_v60 = vrot.slane %v1572_v58, 1  ;;  %v435_v62 = vrot.slane %v1572_v58, 2  ;;  %v436_v63 = vrot.slane %v1572_v58, 3  ;;  %v437_v0 = vrot.slane %v1572_v58, 4 }
 0x14d   : > { %v1562_v50 = vld.sshfl [vmem:[#allocation1 + $0x20] sm:$0xff pattern:$0x73625140]  ;;  %681 = vst [vmem:[#allocation1 + $0x3] ss:$4 sm:$0xff] %v543_v45  ;;  %v438_v2 = vrot.slane %v1572_v58, 5 }
 0x14e   : > { %682 = vst [vmem:[#allocation1 + $0x20] ss:$4 sm:$0xff] %v544_v46  ;;  %v549_v3 = vperm.slane %v434_v60, 0  ;;  %v439_v4 = vrot.slane %v1572_v58, 6  ;;  %v548_v5 = vperm.slane %v1572_v58, 0  ;;  %v550_v6 = vperm.slane %v435_v62, 0 }
 0x14f   : > { %683 = vst [vmem:[#allocation1 + $0x21] ss:$4 sm:$0xff] %v545_v47  ;;  %v349_v61 = vpop.f32.mrf.mxu0  ;;  %v440_v8 = vrot.slane %v1572_v58, 7  ;;  %v551_v9 = vperm.slane %v436_v63, 0  ;;  %v552_v10 = vperm.slane %v437_v0, 0  ;;  %v553_v13 = vperm.slane %v438_v2, 0 }
 0x150   : > { %684 = vst [vmem:[#allocation1 + $0x22] ss:$4 sm:$0xff] %v546_v49  ;;  %v350_v1 = vadd.f32 %v1555_v12, %v349_v61  ;;  %v554_v14 = vperm.slane %v439_v4, 0 }
 0x151   : > { %685 = vst [vmem:[#allocation1 + $0x23] ss:$4 sm:$0xff] %v547_v51  ;;  %v555_v16 = vperm.slane %v440_v8, 0 }
 0x152   : > { %v391_v11 = vmax.f32 %v350_v1, 0.0 }
 0x154   : > { %v1564_v52 = vld.sshfl [vmem:[#allocation1] sm:$0xff pattern:$0x73625140]  ;;  %v441_v17 = vrot.slane %v391_v11, 1  ;;  %v442_v18 = vrot.slane %v391_v11, 2  ;;  %v443_v19 = vrot.slane %v391_v11, 3 }
 0x155   : > { %688 = vst [vmem:[#allocation1] ss:$4 sm:$0xff] %v532_v22  ;;  %v444_v20 = vrot.slane %v391_v11, 4  ;;  %v445_v21 = vrot.slane %v391_v11, 5  ;;  %v446_v23 = vrot.slane %v391_v11, 6 }
 0x156   : > { %689 = vst [vmem:[#allocation1 + $0x1] ss:$4 sm:$0xff] %v533_v24  ;;  %v557_v22 = vperm.slane %v441_v17, 0  ;;  %v556_v24 = vperm.slane %v391_v11, 0  ;;  %v559_v28 = vperm.slane %v443_v19, 0 }
 0x157   : > { %690 = vst [vmem:[#allocation1 + $0x2] ss:$4 sm:$0xff] %v534_v25  ;;  %v558_v25 = vperm.slane %v442_v18, 0  ;;  %v561_v30 = vperm.slane %v445_v21, 0  ;;  %v352_v37 = vpop.f32.mrf.mxu0 }
 0x158   : > { %v1566_v53 = vld.sshfl [vmem:[#allocation1 + $0x20] sm:$0xff pattern:$0x73625140]  ;;  %691 = vst [vmem:[#allocation1 + $0x3] ss:$4 sm:$0xff] %v535_v26  ;;  %v353_v38 = vadd.f32 %v1555_v12, %v352_v37 }
 0x159   : > { %692 = vst [vmem:[#allocation1 + $0x20] ss:$4 sm:$0xff] %v536_v27  ;;  %v447_v27 = vrot.slane %v391_v11, 7 }
 0x15a   : > { %693 = vst [vmem:[#allocation1 + $0x21] ss:$4 sm:$0xff] %v537_v29  ;;  %v560_v29 = vperm.slane %v444_v20, 0 }
 0x15b   : > { %694 = vst [vmem:[#allocation1 + $0x22] ss:$4 sm:$0xff] %v538_v31  ;;  %v266_v31 = vpop.trf.xlu0  ;;  %v563_v34 = vperm.slane %v447_v27, 0 }
 0x15c   : > { %695 = vst [vmem:[#allocation1 + $0x23] ss:$4 sm:$0xff] %v539_v32  ;;  %v562_v32 = vperm.slane %v446_v23, 0  ;;  %1317 = vmatmul.msk.f32.gmra.mxu0 %vm270_vm1, %v266_v31 }
 0x15f   : > { %v1570_v57 = vld.sshfl [vmem:[#allocation1] sm:$0xff pattern:$0x73625140] }
 0x160   : > { %698 = vst [vmem:[#allocation1] ss:$4 sm:$0xff] %v540_v41  ;;  %v1602_v41 = vmax.f32 %v353_v38, 0.0 }
 0x161   : > { %699 = vst [vmem:[#allocation1 + $0x1] ss:$4 sm:$0xff] %v541_v39 }
 0x162   : > { %700 = vst [vmem:[#allocation1 + $0x2] ss:$4 sm:$0xff] %v542_v42  ;;  %v448_v44 = vrot.slane %v1602_v41, 1  ;;  %v451_v48 = vrot.slane %v1602_v41, 4  ;;  %v453_v55 = vrot.slane %v1602_v41, 6  ;;  %v564_v56 = vperm.slane %v1602_v41, 0 }
 0x163   : > { %v1574_v59 = vld.sshfl [vmem:[#allocation1 + $0x20] sm:$0xff pattern:$0x73625140]  ;;  %701 = vst [vmem:[#allocation1 + $0x3] ss:$4 sm:$0xff] %v543_v45  ;;  %v267_v39 = vpop.trf.xlu0  ;;  %v355_v45 = vpop.f32.mrf.mxu0  ;;  %v454_v61 = vrot.slane %v1602_v41, 7 }
 0x164   : > { %702 = vst [vmem:[#allocation1 + $0x20] ss:$4 sm:$0xff] %v544_v46  ;;  %1318 = vmatmul.msk.f32.gmra.mxu0 %vm270_vm1, %v267_v39  ;;  %v449_v46 = vrot.slane %v1602_v41, 2  ;;  %v565_v54 = vperm.slane %v448_v44, 0  ;;  %v568_v63 = vperm.slane %v451_v48, 0  ;;  %v570_v2 = vperm.slane %v453_v55, 0 }
 0x165   : > { %703 = vst [vmem:[#allocation1 + $0x21] ss:$4 sm:$0xff] %v545_v47  ;;  %v450_v47 = vrot.slane %v1602_v41, 3  ;;  %v571_v4 = vperm.slane %v454_v61, 0 }
 0x166   : > { %704 = vst [vmem:[#allocation1 + $0x22] ss:$4 sm:$0xff] %v546_v49  ;;  %v356_v49 = vadd.f32 %v1555_v12, %v355_v45  ;;  %v566_v58 = vperm.slane %v449_v46, 0 }
 0x167   : > { %705 = vst [vmem:[#allocation1 + $0x23] ss:$4 sm:$0xff] %v547_v51  ;;  %v452_v51 = vrot.slane %v1602_v41, 5  ;;  %v567_v62 = vperm.slane %v450_v47, 0 }
 0x168   : > { %v1613_v0 = vmax.f32 %v356_v49, 0.0 }
 0x169   : > { %v569_v1 = vperm.slane %v452_v51, 0 }
 0x16a   : > { %v1584_v7 = vld.sshfl [vmem:[#allocation1] sm:$0xff pattern:$0x73625140]  ;;  %v457_v8 = vrot.slane %v1613_v0, 3  ;;  %v461_v18 = vrot.slane %v1613_v0, 7 }
 0x16b   : > { %708 = vst [vmem:[#allocation1] ss:$4 sm:$0xff] %v548_v5 }
 0x16c   : > { %709 = vst [vmem:[#allocation1 + $0x1] ss:$4 sm:$0xff] %v549_v3  ;;  %v575_v19 = vperm.slane %v457_v8, 0 }
 0x16d   : > { %710 = vst [vmem:[#allocation1 + $0x2] ss:$4 sm:$0xff] %v550_v6 }
 0x16e   : > { %v1587_v15 = vld.sshfl [vmem:[#allocation1 + $0x20] sm:$0xff pattern:$0x73625140]  ;;  %711 = vst [vmem:[#allocation1 + $0x3] ss:$4 sm:$0xff] %v551_v9 }
 0x16f   : > { %712 = vst [vmem:[#allocation1 + $0x20] ss:$4 sm:$0xff] %v552_v10 }
 0x170   : > { %713 = vst [vmem:[#allocation1 + $0x21] ss:$4 sm:$0xff] %v553_v13 }
 0x171   : > { %714 = vst [vmem:[#allocation1 + $0x22] ss:$4 sm:$0xff] %v554_v14 }
 0x172   : > { %715 = vst [vmem:[#allocation1 + $0x23] ss:$4 sm:$0xff] %v555_v16 }
 0x175   : > { %v1589_v26 = vld.sshfl [vmem:[#allocation1] sm:$0xff pattern:$0x73625140] }
 0x176   : > { %718 = vst [vmem:[#allocation1] ss:$4 sm:$0xff] %v556_v24 }
 0x177   : > { %719 = vst [vmem:[#allocation1 + $0x1] ss:$4 sm:$0xff] %v557_v22 }
 0x178   : > { %720 = vst [vmem:[#allocation1 + $0x2] ss:$4 sm:$0xff] %v558_v25 }
 0x179   : > { %v1592_v33 = vld.sshfl [vmem:[#allocation1 + $0x20] sm:$0xff pattern:$0x73625140]  ;;  %721 = vst [vmem:[#allocation1 + $0x3] ss:$4 sm:$0xff] %v559_v28 }
 0x17a   : > { %722 = vst [vmem:[#allocation1 + $0x20] ss:$4 sm:$0xff] %v560_v29 }
 0x17b   : > { %723 = vst [vmem:[#allocation1 + $0x21] ss:$4 sm:$0xff] %v561_v30 }
 0x17c   : > { %724 = vst [vmem:[#allocation1 + $0x22] ss:$4 sm:$0xff] %v562_v32 }
 0x17d   : > { %725 = vst [vmem:[#allocation1 + $0x23] ss:$4 sm:$0xff] %v563_v34 }
 0x180   : > { %v1594_v35 = vld.sshfl [vmem:[#allocation1] sm:$0xff pattern:$0x73625140] }
 0x181   : > { %728 = vst [vmem:[#allocation1] ss:$4 sm:$0xff] %v548_v5  ;;  %v455_v5 = vrot.slane %v1613_v0, 1 }
 0x182   : > { %729 = vst [vmem:[#allocation1 + $0x1] ss:$4 sm:$0xff] %v549_v3 }
 0x183   : > { %730 = vst [vmem:[#allocation1 + $0x2] ss:$4 sm:$0xff] %v550_v6  ;;  %v456_v6 = vrot.slane %v1613_v0, 2  ;;  %v573_v11 = vperm.slane %v455_v5, 0 }
 0x184   : > { %v1596_v36 = vld.sshfl [vmem:[#allocation1 + $0x20] sm:$0xff pattern:$0x73625140]  ;;  %731 = vst [vmem:[#allocation1 + $0x3] ss:$4 sm:$0xff] %v551_v9  ;;  %v458_v9 = vrot.slane %v1613_v0, 4 }
 0x185   : > { %732 = vst [vmem:[#allocation1 + $0x20] ss:$4 sm:$0xff] %v552_v10  ;;  %v459_v10 = vrot.slane %v1613_v0, 5 }
 0x186   : > { %733 = vst [vmem:[#allocation1 + $0x21] ss:$4 sm:$0xff] %v553_v13  ;;  %v460_v13 = vrot.slane %v1613_v0, 6  ;;  %v576_v20 = vperm.slane %v458_v9, 0 }
 0x187   : > { %734 = vst [vmem:[#allocation1 + $0x22] ss:$4 sm:$0xff] %v554_v14  ;;  %v572_v14 = vperm.slane %v1613_v0, 0  ;;  %v577_v21 = vperm.slane %v459_v10, 0 }
 0x188   : > { %735 = vst [vmem:[#allocation1 + $0x23] ss:$4 sm:$0xff] %v555_v16  ;;  %v574_v16 = vperm.slane %v456_v6, 0  ;;  %v578_v23 = vperm.slane %v460_v13, 0 }
 0x18b   : > { %v1600_v40 = vld.sshfl [vmem:[#allocation1] sm:$0xff pattern:$0x73625140] }
 0x18c   : > { %738 = vst [vmem:[#allocation1] ss:$4 sm:$0xff] %v556_v24 }
 0x18d   : > { %739 = vst [vmem:[#allocation1 + $0x1] ss:$4 sm:$0xff] %v557_v22  ;;  %v268_v22 = vpop.trf.xlu0 }
 0x18e   : > { %740 = vst [vmem:[#allocation1 + $0x2] ss:$4 sm:$0xff] %v558_v25  ;;  %1319 = vmatmul.msk.f32.gmra.mxu0 %vm270_vm1, %v268_v22  ;;  %v579_v25 = vperm.slane %v461_v18, 0 }
 0x18f   : > { %v737_v42 = vld.sshfl [vmem:[#allocation1 + $0x20] sm:$0xff pattern:$0x73625140]  ;;  %741 = vst [vmem:[#allocation1 + $0x3] ss:$4 sm:$0xff] %v559_v28 }
 0x190   : > { %742 = vst [vmem:[#allocation1 + $0x20] ss:$4 sm:$0xff] %v560_v29  ;;  %v358_v29 = vpop.f32.mrf.mxu0 }
 0x191   : > { %743 = vst [vmem:[#allocation1 + $0x21] ss:$4 sm:$0xff] %v561_v30  ;;  %v359_v30 = vadd.f32 %v1555_v12, %v358_v29 }
 0x192   : > { %744 = vst [vmem:[#allocation1 + $0x22] ss:$4 sm:$0xff] %v562_v32 }
 0x193   : > { %745 = vst [vmem:[#allocation1 + $0x23] ss:$4 sm:$0xff] %v563_v34  ;;  %v1649_v34 = vmax.f32 %v359_v30, 0.0 }
 0x195   : > { %v269_v31 = vpop.trf.xlu0  ;;  %v463_v37 = vrot.slane %v1649_v34, 2  ;;  %v465_v38 = vrot.slane %v1649_v34, 4  ;;  %v467_v41 = vrot.slane %v1649_v34, 6  ;;  %v468_v46 = vrot.slane %v1649_v34, 7 }
 0x196   : > { %v746_v60 = vld.sshfl [vmem:[#allocation1] sm:$0xff pattern:$0x73625140]  ;;  %1320 = vmatmul.msk.f32.gmra.mxu0 %vm270_vm1, %v269_v31 }
 0x197   : > { %748 = vst [vmem:[#allocation1] ss:$4 sm:$0xff] %v564_v56  ;;  %v582_v44 = vperm.slane %v463_v37, 0  ;;  %v584_v48 = vperm.slane %v465_v38, 0  ;;  %v586_v51 = vperm.slane %v467_v41, 0  ;;  %v587_v55 = vperm.slane %v468_v46, 0 }
 0x198   : > { %749 = vst [vmem:[#allocation1 + $0x1] ss:$4 sm:$0xff] %v565_v54 }
 0x199   : > { %750 = vst [vmem:[#allocation1 + $0x2] ss:$4 sm:$0xff] %v566_v58 }
 0x19a   : > { %v747_v3 = vld.sshfl [vmem:[#allocation1 + $0x20] sm:$0xff pattern:$0x73625140]  ;;  %751 = vst [vmem:[#allocation1 + $0x3] ss:$4 sm:$0xff] %v567_v62 }
 0x19b   : > { %752 = vst [vmem:[#allocation1 + $0x20] ss:$4 sm:$0xff] %v568_v63  ;;  %1321 = vmatpush.xpose.msk.msra.mxu1 %vm988_vm2, %v747_v3 }
 0x19c   : > { %753 = vst [vmem:[#allocation1 + $0x21] ss:$4 sm:$0xff] %v569_v1 }
 0x19d   : > { %754 = vst [vmem:[#allocation1 + $0x22] ss:$4 sm:$0xff] %v570_v2 }
 0x19e   : > { %755 = vst [vmem:[#allocation1 + $0x23] ss:$4 sm:$0xff] %v571_v4 }
 0x19f   : > { %1322 = vmatpush.xpose.msk.msra.mxu1 %vm988_vm2, %v746_v60 }
 0x1a1   : > { %v1624_v17 = vld.sshfl [vmem:[#allocation1] sm:$0xff pattern:$0x73625140] }
 0x1a2   : > { %758 = vst [vmem:[#allocation1] ss:$4 sm:$0xff] %v572_v14 }
 0x1a3   : > { %759 = vst [vmem:[#allocation1 + $0x1] ss:$4 sm:$0xff] %v573_v11  ;;  %1323 = vmatpush.xpose.msk.msra.mxu1 %vm988_vm2, %v737_v42  ;;  %v580_v42 = vperm.slane %v1649_v34, 0 }
 0x1a4   : > { %760 = vst [vmem:[#allocation1 + $0x2] ss:$4 sm:$0xff] %v574_v16 }
 0x1a5   : > { %v1629_v24 = vld.sshfl [vmem:[#allocation1 + $0x20] sm:$0xff pattern:$0x73625140]  ;;  %761 = vst [vmem:[#allocation1 + $0x3] ss:$4 sm:$0xff] %v575_v19 }
 0x1a6   : > { %762 = vst [vmem:[#allocation1 + $0x20] ss:$4 sm:$0xff] %v576_v20 }
 0x1a7   : > { %763 = vst [vmem:[#allocation1 + $0x21] ss:$4 sm:$0xff] %v577_v21  ;;  %1324 = vmatpush.xpose.msk.msra.mxu1 %vm988_vm2, %v1600_v40 }
 0x1a8   : > { %764 = vst [vmem:[#allocation1 + $0x22] ss:$4 sm:$0xff] %v578_v23 }
 0x1a9   : > { %765 = vst [vmem:[#allocation1 + $0x23] ss:$4 sm:$0xff] %v579_v25 }
 0x1ab   : > { %1325 = vmatpush.xpose.msk.msra.mxu1 %vm988_vm2, %v1596_v36  ;;  %v361_v36 = vpop.f32.mrf.mxu0 }
 0x1ac   : > { %v1635_v27 = vld.sshfl [vmem:[#allocation1] sm:$0xff pattern:$0x73625140]  ;;  %v362_v39 = vadd.f32 %v1555_v12, %v361_v36 }
 0x1ad   : > { %768 = vst [vmem:[#allocation1] ss:$4 sm:$0xff] %v564_v56 }
 0x1ae   : > { %769 = vst [vmem:[#allocation1 + $0x1] ss:$4 sm:$0xff] %v565_v54  ;;  %v395_v49 = vmax.f32 %v362_v39, 0.0 }
 0x1af   : > { %770 = vst [vmem:[#allocation1 + $0x2] ss:$4 sm:$0xff] %v566_v58  ;;  %1326 = vmatpush.xpose.msk.msra.mxu1 %vm988_vm2, %v1594_v35 }
 0x1b0   : > { %v1639_v28 = vld.sshfl [vmem:[#allocation1 + $0x20] sm:$0xff pattern:$0x73625140]  ;;  %771 = vst [vmem:[#allocation1 + $0x3] ss:$4 sm:$0xff] %v567_v62  ;;  %v469_v56 = vrot.slane %v395_v49, 1 }
 0x1b1   : > { %772 = vst [vmem:[#allocation1 + $0x20] ss:$4 sm:$0xff] %v568_v63  ;;  %v470_v58 = vrot.slane %v395_v49, 2  ;;  %v471_v60 = vrot.slane %v395_v49, 3  ;;  %v472_v61 = vrot.slane %v395_v49, 4  ;;  %v474_v63 = vrot.slane %v395_v49, 6 }
 0x1b2   : > { %773 = vst [vmem:[#allocation1 + $0x21] ss:$4 sm:$0xff] %v569_v1  ;;  %v589_v62 = vperm.slane %v469_v56, 0  ;;  %v588_v0 = vperm.slane %v395_v49, 0  ;;  %v475_v3 = vrot.slane %v395_v49, 7 }
 0x1b3   : > { %774 = vst [vmem:[#allocation1 + $0x22] ss:$4 sm:$0xff] %v570_v2  ;;  %1327 = vmatpush.xpose.msk.msra.mxu1 %vm988_vm2, %v1592_v33  ;;  %v462_v33 = vrot.slane %v1649_v34, 1  ;;  %v590_v1 = vperm.slane %v470_v58, 0  ;;  %v592_v5 = vperm.slane %v472_v61, 0  ;;  %v594_v6 = vperm.slane %v474_v63, 0  ;;  %v364_v10 = vpop.f32.mrf.mxu0 }
 0x1b4   : > { %775 = vst [vmem:[#allocation1 + $0x23] ss:$4 sm:$0xff] %v571_v4  ;;  %v591_v4 = vperm.slane %v471_v60, 0  ;;  %v595_v9 = vperm.slane %v475_v3, 0 }
 0x1b5   : > { %v581_v40 = vperm.slane %v462_v33, 0 }
 0x1b7   : > { %v1645_v32 = vld.sshfl [vmem:[#allocation1] sm:$0xff pattern:$0x73625140]  ;;  %1328 = vmatpush.xpose.msk.msra.mxu1 %vm988_vm2, %v1589_v26  ;;  %v464_v26 = vrot.slane %v1649_v34, 3 }
 0x1b8   : > { %778 = vst [vmem:[#allocation1] ss:$4 sm:$0xff] %v572_v14 }
 0x1b9   : > { %779 = vst [vmem:[#allocation1 + $0x1] ss:$4 sm:$0xff] %v573_v11  ;;  %v583_v47 = vperm.slane %v464_v26, 0 }
 0x1ba   : > { %780 = vst [vmem:[#allocation1 + $0x2] ss:$4 sm:$0xff] %v574_v16 }
 0x1bb   : > { %v1651_v35 = vld.sshfl [vmem:[#allocation1 + $0x20] sm:$0xff pattern:$0x73625140]  ;;  %781 = vst [vmem:[#allocation1 + $0x3] ss:$4 sm:$0xff] %v575_v19  ;;  %1329 = vmatpush.xpose.msk.msra.mxu1 %vm988_vm2, %v1587_v15  ;;  %v466_v15 = vrot.slane %v1649_v34, 5  ;;  %v367_v16 = vpop.f32.mrf.mxu0 }
 0x1bc   : > { %782 = vst [vmem:[#allocation1 + $0x20] ss:$4 sm:$0xff] %v576_v20 }
 0x1bd   : > { %783 = vst [vmem:[#allocation1 + $0x21] ss:$4 sm:$0xff] %v577_v21  ;;  %v368_v21 = vadd.f32 %v1555_v12, %v367_v16 }
 0x1be   : > { %784 = vst [vmem:[#allocation1 + $0x22] ss:$4 sm:$0xff] %v578_v23 }
 0x1bf   : > { %785 = vst [vmem:[#allocation1 + $0x23] ss:$4 sm:$0xff] %v579_v25  ;;  %1330 = vmatpush.xpose.msk.msra.mxu1 %vm988_vm2, %v1584_v7  ;;  %v585_v7 = vperm.slane %v466_v15, 0  ;;  %v397_v37 = vmax.f32 %v368_v21, 0.0 }
 0x1c1   : > { %v484_v41 = vrot.slane %v397_v37, 2  ;;  %v487_v46 = vrot.slane %v397_v37, 5 }
 0x1c2   : > { %v1665_v45 = vld.sshfl [vmem:[#allocation1] sm:$0xff pattern:$0x73625140] }
 0x1c3   : > { %788 = vst [vmem:[#allocation1] ss:$4 sm:$0xff] %v580_v42  ;;  %1331 = vmatpush.xpose.msk.msra.mxu1 %vm988_vm2, %v1574_v59  ;;  %v473_v59 = vrot.slane %v395_v49, 5  ;;  %v604_v49 = vperm.slane %v397_v37, 0  ;;  %v609_v60 = vperm.slane %v487_v46, 0 }
 0x1c4   : > { %789 = vst [vmem:[#allocation1 + $0x1] ss:$4 sm:$0xff] %v581_v40 }
 0x1c5   : > { %790 = vst [vmem:[#allocation1 + $0x2] ss:$4 sm:$0xff] %v582_v44 }
 0x1c6   : > { %v1670_v54 = vld.sshfl [vmem:[#allocation1 + $0x20] sm:$0xff pattern:$0x73625140]  ;;  %791 = vst [vmem:[#allocation1 + $0x3] ss:$4 sm:$0xff] %v583_v47 }
 0x1c7   : > { %792 = vst [vmem:[#allocation1 + $0x20] ss:$4 sm:$0xff] %v584_v48  ;;  %1332 = vmatpush.xpose.msk.msra.mxu1 %vm988_vm2, %v1570_v57  ;;  %v593_v57 = vperm.slane %v473_v59, 0 }
 0x1c8   : > { %793 = vst [vmem:[#allocation1 + $0x21] ss:$4 sm:$0xff] %v585_v7 }
 0x1c9   : > { %794 = vst [vmem:[#allocation1 + $0x22] ss:$4 sm:$0xff] %v586_v51 }
 0x1ca   : > { %795 = vst [vmem:[#allocation1 + $0x23] ss:$4 sm:$0xff] %v587_v55 }
 0x1cb   : > { %1333 = vmatpush.xpose.msk.msra.mxu1 %vm988_vm2, %v1566_v53 }
 0x1cd   : > { %v1676_v2 = vld.sshfl [vmem:[#allocation1] sm:$0xff pattern:$0x73625140] }
 0x1ce   : > { %798 = vst [vmem:[#allocation1] ss:$4 sm:$0xff] %v588_v0 }
 0x1cf   : > { %799 = vst [vmem:[#allocation1 + $0x1] ss:$4 sm:$0xff] %v589_v62  ;;  %1334 = vmatpush.xpose.msk.msra.mxu1 %vm988_vm2, %v1564_v52 }
 0x1d0   : > { %800 = vst [vmem:[#allocation1 + $0x2] ss:$4 sm:$0xff] %v590_v1 }
 0x1d1   : > { %v1680_v8 = vld.sshfl [vmem:[#allocation1 + $0x20] sm:$0xff pattern:$0x73625140]  ;;  %801 = vst [vmem:[#allocation1 + $0x3] ss:$4 sm:$0xff] %v591_v4 }
 0x1d2   : > { %802 = vst [vmem:[#allocation1 + $0x20] ss:$4 sm:$0xff] %v592_v5 }
 0x1d3   : > { %803 = vst [vmem:[#allocation1 + $0x21] ss:$4 sm:$0xff] %v593_v57  ;;  %1335 = vmatpush.xpose.msk.msra.mxu1 %vm988_vm2, %v1562_v50  ;;  %v365_v50 = vadd.f32 %v1555_v12, %v364_v10 }
 0x1d4   : > { %804 = vst [vmem:[#allocation1 + $0x22] ss:$4 sm:$0xff] %v594_v6 }
 0x1d5   : > { %805 = vst [vmem:[#allocation1 + $0x23] ss:$4 sm:$0xff] %v595_v9  ;;  %v1693_v13 = vmax.f32 %v365_v50, 0.0 }
 0x1d7   : > { %1336 = vmatpush.xpose.msk.msra.mxu1 %vm988_vm2, %v1559_v43  ;;  %v476_v14 = vrot.slane %v1693_v13, 1  ;;  %v477_v18 = vrot.slane %v1693_v13, 2  ;;  %v478_v19 = vrot.slane %v1693_v13, 3  ;;  %v479_v20 = vrot.slane %v1693_v13, 4 }
 0x1d8   : > { %v1686_v53 = vld.sshfl [vmem:[#allocation1] sm:$0xff pattern:$0x73625140]  ;;  %v480_v22 = vrot.slane %v1693_v13, 5  ;;  %v481_v25 = vrot.slane %v1693_v13, 6  ;;  %v596_v29 = vperm.slane %v1693_v13, 0 }
 0x1d9   : > { %808 = vst [vmem:[#allocation1] ss:$4 sm:$0xff] %v580_v42  ;;  %v597_v23 = vperm.slane %v476_v14, 0  ;;  %v598_v30 = vperm.slane %v477_v18, 0  ;;  %v482_v34 = vrot.slane %v1693_v13, 7  ;;  %v599_v33 = vperm.slane %v478_v19, 0 }
 0x1da   : > { %809 = vst [vmem:[#allocation1 + $0x1] ss:$4 sm:$0xff] %v581_v40  ;;  %v600_v36 = vperm.slane %v479_v20, 0  ;;  %v601_v26 = vperm.slane %v480_v22, 0  ;;  %v602_v38 = vperm.slane %v481_v25, 0  ;;  %v483_v40 = vrot.slane %v397_v37, 1 }
 0x1db   : > { %810 = vst [vmem:[#allocation1 + $0x2] ss:$4 sm:$0xff] %v582_v44  ;;  %v603_v15 = vperm.slane %v482_v34, 0  ;;  %v485_v42 = vrot.slane %v397_v37, 3  ;;  %v486_v44 = vrot.slane %v397_v37, 4 }
 0x1dc   : > { %v1688_v52 = vld.sshfl [vmem:[#allocation1 + $0x20] sm:$0xff pattern:$0x73625140]  ;;  %811 = vst [vmem:[#allocation1 + $0x3] ss:$4 sm:$0xff] %v583_v47  ;;  %v605_v47 = vperm.slane %v483_v40, 0 }
 0x1dd   : > { %812 = vst [vmem:[#allocation1 + $0x20] ss:$4 sm:$0xff] %v584_v48  ;;  %v488_v48 = vrot.slane %v397_v37, 6  ;;  %v607_v56 = vperm.slane %v485_v42, 0  ;;  %v608_v58 = vperm.slane %v486_v44, 0 }
 0x1de   : > { %813 = vst [vmem:[#allocation1 + $0x21] ss:$4 sm:$0xff] %v585_v7  ;;  %v606_v7 = vperm.slane %v484_v41, 0 }
 0x1df   : > { %814 = vst [vmem:[#allocation1 + $0x22] ss:$4 sm:$0xff] %v586_v51  ;;  %v610_v61 = vperm.slane %v488_v48, 0 }
 0x1e0   : > { %815 = vst [vmem:[#allocation1 + $0x23] ss:$4 sm:$0xff] %v587_v55  ;;  %v489_v55 = vrot.slane %v397_v37, 7 }
 0x1e3   : > { %v1691_v11 = vld.sshfl [vmem:[#allocation1] sm:$0xff pattern:$0x73625140] }
 0x1e4   : > { %818 = vst [vmem:[#allocation1] ss:$4 sm:$0xff] %v588_v0 }
 0x1e5   : > { %819 = vst [vmem:[#allocation1 + $0x1] ss:$4 sm:$0xff] %v589_v62  ;;  %v611_v62 = vperm.slane %v489_v55, 0 }
 0x1e6   : > { %820 = vst [vmem:[#allocation1 + $0x2] ss:$4 sm:$0xff] %v590_v1  ;;  %v370_v1 = vpop.f32.mrf.mxu0 }
 0x1e7   : > { %v817_v43 = vld.sshfl [vmem:[#allocation1 + $0x20] sm:$0xff pattern:$0x73625140]  ;;  %821 = vst [vmem:[#allocation1 + $0x3] ss:$4 sm:$0xff] %v591_v4  ;;  %v371_v3 = vadd.f32 %v1555_v12, %v370_v1 }
 0x1e8   : > { %822 = vst [vmem:[#allocation1 + $0x20] ss:$4 sm:$0xff] %v592_v5 }
 0x1e9   : > { %823 = vst [vmem:[#allocation1 + $0x21] ss:$4 sm:$0xff] %v593_v57  ;;  %v1728_v5 = vmax.f32 %v371_v3, 0.0 }
 0x1ea   : > { %824 = vst [vmem:[#allocation1 + $0x22] ss:$4 sm:$0xff] %v594_v6 }
 0x1eb   : > { %825 = vst [vmem:[#allocation1 + $0x23] ss:$4 sm:$0xff] %v595_v9  ;;  %v490_v6 = vrot.slane %v1728_v5, 1  ;;  %v491_v9 = vrot.slane %v1728_v5, 2  ;;  %v495_v50 = vrot.slane %v1728_v5, 6  ;;  %v496_v14 = vrot.slane %v1728_v5, 7 }
 0x1ed   : > { %v613_v10 = vperm.slane %v490_v6, 0  ;;  %v614_v13 = vperm.slane %v491_v9, 0  ;;  %v618_v20 = vperm.slane %v495_v50, 0  ;;  %v619_v22 = vperm.slane %v496_v14, 0 }
 0x1ee   : > { %v826_v31 = vld.sshfl [vmem:[#allocation1] sm:$0xff pattern:$0x73625140] }
 0x1ef   : > { %828 = vst [vmem:[#allocation1] ss:$4 sm:$0xff] %v596_v29 }
 0x1f0   : > { %829 = vst [vmem:[#allocation1 + $0x1] ss:$4 sm:$0xff] %v597_v23 }
 0x1f1   : > { %830 = vst [vmem:[#allocation1 + $0x2] ss:$4 sm:$0xff] %v598_v30 }
 0x1f2   : > { %v827_v39 = vld.sshfl [vmem:[#allocation1 + $0x20] sm:$0xff pattern:$0x73625140]  ;;  %831 = vst [vmem:[#allocation1 + $0x3] ss:$4 sm:$0xff] %v599_v33 }
 0x1f3   : > { %832 = vst [vmem:[#allocation1 + $0x20] ss:$4 sm:$0xff] %v600_v36  ;;  %1338 = vmatpush.xpose.msk.msra.mxu2 %vm988_vm2, %v827_v39 }
 0x1f4   : > { %833 = vst [vmem:[#allocation1 + $0x21] ss:$4 sm:$0xff] %v601_v26 }
 0x1f5   : > { %834 = vst [vmem:[#allocation1 + $0x22] ss:$4 sm:$0xff] %v602_v38 }
 0x1f6   : > { %835 = vst [vmem:[#allocation1 + $0x23] ss:$4 sm:$0xff] %v603_v15 }
 0x1f7   : > { %1339 = vmatpush.xpose.msk.msra.mxu2 %vm988_vm2, %v826_v31 }
 0x1f9   : > { %v1706_v51 = vld.sshfl [vmem:[#allocation1] sm:$0xff pattern:$0x73625140] }
 0x1fa   : > { %838 = vst [vmem:[#allocation1] ss:$4 sm:$0xff] %v604_v49 }
 0x1fb   : > { %839 = vst [vmem:[#allocation1 + $0x1] ss:$4 sm:$0xff] %v605_v47  ;;  %1340 = vmatpush.xpose.msk.msra.mxu2 %vm988_vm2, %v817_v43 }
 0x1fc   : > { %840 = vst [vmem:[#allocation1 + $0x2] ss:$4 sm:$0xff] %v606_v7 }
 0x1fd   : > { %v1709_v59 = vld.sshfl [vmem:[#allocation1 + $0x20] sm:$0xff pattern:$0x73625140]  ;;  %841 = vst [vmem:[#allocation1 + $0x3] ss:$4 sm:$0xff] %v607_v56 }
 0x1fe   : > { %842 = vst [vmem:[#allocation1 + $0x20] ss:$4 sm:$0xff] %v608_v58 }
 0x1ff   : > { %843 = vst [vmem:[#allocation1 + $0x21] ss:$4 sm:$0xff] %v609_v60  ;;  %1341 = vmatpush.xpose.msk.msra.mxu2 %vm988_vm2, %v1691_v11  ;;  %v612_v11 = vperm.slane %v1728_v5, 0 }
 0x200   : > { %844 = vst [vmem:[#allocation1 + $0x22] ss:$4 sm:$0xff] %v610_v61 }
 0x201   : > { %845 = vst [vmem:[#allocation1 + $0x23] ss:$4 sm:$0xff] %v611_v62 }
 0x203   : > { %1342 = vmatpush.xpose.msk.msra.mxu2 %vm988_vm2, %v1688_v52 }
 0x204   : > { %v1715_v63 = vld.sshfl [vmem:[#allocation1] sm:$0xff pattern:$0x73625140] }
 0x205   : > { %848 = vst [vmem:[#allocation1] ss:$4 sm:$0xff] %v596_v29 }
 0x206   : > { %849 = vst [vmem:[#allocation1 + $0x1] ss:$4 sm:$0xff] %v597_v23 }
 0x207   : > { %850 = vst [vmem:[#allocation1 + $0x2] ss:$4 sm:$0xff] %v598_v30  ;;  %1343 = vmatpush.xpose.msk.msra.mxu2 %vm988_vm2, %v1686_v53  ;;  %v493_v53 = vrot.slane %v1728_v5, 4 }
 0x208   : > { %v1719_v0 = vld.sshfl [vmem:[#allocation1 + $0x20] sm:$0xff pattern:$0x73625140]  ;;  %851 = vst [vmem:[#allocation1 + $0x3] ss:$4 sm:$0xff] %v599_v33 }
 0x209   : > { %852 = vst [vmem:[#allocation1 + $0x20] ss:$4 sm:$0xff] %v600_v36  ;;  %v616_v18 = vperm.slane %v493_v53, 0 }
 0x20a   : > { %853 = vst [vmem:[#allocation1 + $0x21] ss:$4 sm:$0xff] %v601_v26 }
 0x20b   : > { %854 = vst [vmem:[#allocation1 + $0x22] ss:$4 sm:$0xff] %v602_v38  ;;  %1344 = vmatpush.xpose.msk.msra.mxu2 %vm988_vm2, %v1680_v8  ;;  %v373_v8 = vpop.f32.mrf.mxu0 }
 0x20c   : > { %855 = vst [vmem:[#allocation1 + $0x23] ss:$4 sm:$0xff] %v603_v15  ;;  %v374_v52 = vadd.f32 %v1555_v12, %v373_v8 }
 0x20e   : > { %v399_v19 = vmax.f32 %v374_v52, 0.0 }
 0x20f   : > { %v1724_v4 = vld.sshfl [vmem:[#allocation1] sm:$0xff pattern:$0x73625140]  ;;  %1345 = vmatpush.xpose.msk.msra.mxu2 %vm988_vm2, %v1676_v2  ;;  %v492_v2 = vrot.slane %v1728_v5, 3 }
 0x210   : > { %858 = vst [vmem:[#allocation1] ss:$4 sm:$0xff] %v604_v49  ;;  %v497_v23 = vrot.slane %v399_v19, 1  ;;  %v498_v25 = vrot.slane %v399_v19, 2  ;;  %v499_v29 = vrot.slane %v399_v19, 3  ;;  %v500_v30 = vrot.slane %v399_v19, 4 }
 0x211   : > { %859 = vst [vmem:[#allocation1 + $0x1] ss:$4 sm:$0xff] %v605_v47  ;;  %v615_v16 = vperm.slane %v492_v2, 0  ;;  %v502_v34 = vrot.slane %v399_v19, 6  ;;  %v620_v33 = vperm.slane %v399_v19, 0  ;;  %v503_v26 = vrot.slane %v399_v19, 7 }
 0x212   : > { %860 = vst [vmem:[#allocation1 + $0x2] ss:$4 sm:$0xff] %v606_v7  ;;  %v621_v31 = vperm.slane %v497_v23, 0  ;;  %v622_v36 = vperm.slane %v498_v25, 0  ;;  %v623_v38 = vperm.slane %v499_v29, 0  ;;  %v624_v39 = vperm.slane %v500_v30, 0 }
 0x213   : > { %v1730_v57 = vld.sshfl [vmem:[#allocation1 + $0x20] sm:$0xff pattern:$0x73625140]  ;;  %861 = vst [vmem:[#allocation1 + $0x3] ss:$4 sm:$0xff] %v607_v56  ;;  %1346 = vmatpush.xpose.msk.msra.mxu2 %vm988_vm2, %v1670_v54  ;;  %v494_v54 = vrot.slane %v1728_v5, 5  ;;  %v376_v42 = vpop.f32.mrf.mxu0 }
 0x214   : > { %862 = vst [vmem:[#allocation1 + $0x20] ss:$4 sm:$0xff] %v608_v58  ;;  %v626_v15 = vperm.slane %v502_v34, 0  ;;  %v627_v41 = vperm.slane %v503_v26, 0 }
 0x215   : > { %863 = vst [vmem:[#allocation1 + $0x21] ss:$4 sm:$0xff] %v609_v60 }
 0x216   : > { %864 = vst [vmem:[#allocation1 + $0x22] ss:$4 sm:$0xff] %v610_v61 }
 0x217   : > { %865 = vst [vmem:[#allocation1 + $0x23] ss:$4 sm:$0xff] %v611_v62  ;;  %1347 = vmatpush.xpose.msk.msra.mxu2 %vm988_vm2, %v1665_v45  ;;  %v617_v45 = vperm.slane %v494_v54, 0 }
 0x21a   : > { %v1744_v43 = vld.sshfl [vmem:[#allocation1] sm:$0xff pattern:$0x73625140] }
 0x21b   : > { %868 = vst [vmem:[#allocation1] ss:$4 sm:$0xff] %v612_v11  ;;  %1348 = vmatpush.xpose.msk.msra.mxu2 %vm988_vm2, %v1651_v35  ;;  %v501_v35 = vrot.slane %v399_v19, 5  ;;  %v379_v48 = vpop.f32.mrf.mxu0 }
 0x21c   : > { %869 = vst [vmem:[#allocation1 + $0x1] ss:$4 sm:$0xff] %v613_v10  ;;  %v380_v56 = vadd.f32 %v1555_v12, %v379_v48 }
 0x21d   : > { %870 = vst [vmem:[#allocation1 + $0x2] ss:$4 sm:$0xff] %v614_v13 }
 0x21e   : > { %v1749_v21 = vld.sshfl [vmem:[#allocation1 + $0x20] sm:$0xff pattern:$0x73625140]  ;;  %871 = vst [vmem:[#allocation1 + $0x3] ss:$4 sm:$0xff] %v615_v16  ;;  %v401_v9 = vmax.f32 %v380_v56, 0.0 }
 0x21f   : > { %872 = vst [vmem:[#allocation1 + $0x20] ss:$4 sm:$0xff] %v616_v18  ;;  %1349 = vmatpush.xpose.msk.msra.mxu2 %vm988_vm2, %v1645_v32  ;;  %v625_v32 = vperm.slane %v501_v35, 0 }
 0x220   : > { %873 = vst [vmem:[#allocation1 + $0x21] ss:$4 sm:$0xff] %v617_v45  ;;  %v511_v54 = vrot.slane %v401_v9, 1  ;;  %v513_v50 = vrot.slane %v401_v9, 3 }
 0x221   : > { %874 = vst [vmem:[#allocation1 + $0x22] ss:$4 sm:$0xff] %v618_v20 }
 0x222   : > { %875 = vst [vmem:[#allocation1 + $0x23] ss:$4 sm:$0xff] %v619_v22  ;;  %v637_v14 = vperm.slane %v511_v54, 0 }
 0x223   : > { %1350 = vmatpush.xpose.msk.msra.mxu2 %vm988_vm2, %v1639_v28 }
 0x225   : > { %v1755_v37 = vld.sshfl [vmem:[#allocation1] sm:$0xff pattern:$0x73625140] }
 0x226   : > { %878 = vst [vmem:[#allocation1] ss:$4 sm:$0xff] %v620_v33 }
 0x227   : > { %879 = vst [vmem:[#allocation1 + $0x1] ss:$4 sm:$0xff] %v621_v31  ;;  %1351 = vmatpush.xpose.msk.msra.mxu2 %vm988_vm2, %v1635_v27 }
 0x228   : > { %880 = vst [vmem:[#allocation1 + $0x2] ss:$4 sm:$0xff] %v622_v36 }
 0x229   : > { %v1759_v40 = vld.sshfl [vmem:[#allocation1 + $0x20] sm:$0xff pattern:$0x73625140]  ;;  %881 = vst [vmem:[#allocation1 + $0x3] ss:$4 sm:$0xff] %v623_v38 }
 0x22a   : > { %882 = vst [vmem:[#allocation1 + $0x20] ss:$4 sm:$0xff] %v624_v39 }
 0x22b   : > { %883 = vst [vmem:[#allocation1 + $0x21] ss:$4 sm:$0xff] %v625_v32  ;;  %1352 = vmatpush.xpose.msk.msra.mxu2 %vm988_vm2, %v1629_v24  ;;  %v377_v24 = vadd.f32 %v1555_v12, %v376_v42 }
 0x22c   : > { %884 = vst [vmem:[#allocation1 + $0x22] ss:$4 sm:$0xff] %v626_v15 }
 0x22d   : > { %885 = vst [vmem:[#allocation1 + $0x23] ss:$4 sm:$0xff] %v627_v41  ;;  %v1772_v46 = vmax.f32 %v377_v24, 0.0 }
 0x22f   : > { %1353 = vmatpush.xpose.msk.msra.mxu2 %vm988_vm2, %v1624_v17  ;;  %v504_v47 = vrot.slane %v1772_v46, 1  ;;  %v505_v49 = vrot.slane %v1772_v46, 2  ;;  %v506_v7 = vrot.slane %v1772_v46, 3  ;;  %v507_v55 = vrot.slane %v1772_v46, 4 }
 0x230   : > { %v1765_v28 = vld.sshfl [vmem:[#allocation1] sm:$0xff pattern:$0x73625140]  ;;  %v508_v58 = vrot.slane %v1772_v46, 5  ;;  %v509_v61 = vrot.slane %v1772_v46, 6  ;;  %v628_v62 = vperm.slane %v1772_v46, 0 }
 0x231   : > { %888 = vst [vmem:[#allocation1] ss:$4 sm:$0xff] %v612_v11  ;;  %v629_v60 = vperm.slane %v504_v47, 0  ;;  %v630_v1 = vperm.slane %v505_v49, 0  ;;  %v510_v3 = vrot.slane %v1772_v46, 7  ;;  %v631_v5 = vperm.slane %v506_v7, 0 }
 0x232   : > { %889 = vst [vmem:[#allocation1 + $0x1] ss:$4 sm:$0xff] %v613_v10  ;;  %v632_v8 = vperm.slane %v507_v55, 0  ;;  %v633_v2 = vperm.slane %v508_v58, 0  ;;  %v634_v53 = vperm.slane %v509_v61, 0  ;;  %v512_v10 = vrot.slane %v401_v9, 2 }
 0x233   : > { %890 = vst [vmem:[#allocation1 + $0x2] ss:$4 sm:$0xff] %v614_v13  ;;  %v635_v12 = vperm.slane %v510_v3, 0  ;;  %v514_v11 = vrot.slane %v401_v9, 4  ;;  %v515_v13 = vrot.slane %v401_v9, 5 }
 0x234   : > { %v1767_v27 = vld.sshfl [vmem:[#allocation1 + $0x20] sm:$0xff pattern:$0x73625140]  ;;  %891 = vst [vmem:[#allocation1 + $0x3] ss:$4 sm:$0xff] %v615_v16  ;;  %v516_v16 = vrot.slane %v401_v9, 6 }
 0x235   : > { %892 = vst [vmem:[#allocation1 + $0x20] ss:$4 sm:$0xff] %v616_v18  ;;  %v636_v18 = vperm.slane %v401_v9, 0  ;;  %v638_v19 = vperm.slane %v512_v10, 0  ;;  %v640_v23 = vperm.slane %v514_v11, 0  ;;  %v641_v25 = vperm.slane %v515_v13, 0 }
 0x236   : > { %893 = vst [vmem:[#allocation1 + $0x21] ss:$4 sm:$0xff] %v617_v45  ;;  %v517_v45 = vrot.slane %v401_v9, 7  ;;  %v642_v29 = vperm.slane %v516_v16, 0  ;;  %v660_v13 = vld [vmem:[%s1895_s3] sm:$0xff] }
 0x237   : > { %894 = vst [vmem:[#allocation1 + $0x22] ss:$4 sm:$0xff] %v618_v20  ;;  %v639_v20 = vperm.slane %v513_v50, 0  ;;  %1337 = vmatmul.msk.f32.vlgmr.msra.gmra.mxu1 %vm988_vm2, %v660_v13  ;;  %1354 = vmatmul.msk.f32.vlgmr.msra.gmra.mxu2 %vm988_vm2, %v660_v13 }
 0x238   : > { %895 = vst [vmem:[#allocation1 + $0x23] ss:$4 sm:$0xff] %v619_v22  ;;  %v643_v30 = vperm.slane %v517_v45, 0 }
 0x23b   : > { %v1770_v44 = vld.sshfl [vmem:[#allocation1] sm:$0xff pattern:$0x73625140] }
 0x23c   : > { %898 = vst [vmem:[#allocation1] ss:$4 sm:$0xff] %v620_v33  ;;  %v382_v33 = vpop.f32.mrf.mxu0 }
 0x23d   : > { %899 = vst [vmem:[#allocation1 + $0x1] ss:$4 sm:$0xff] %v621_v31 }
 0x23e   : > { %900 = vst [vmem:[#allocation1 + $0x2] ss:$4 sm:$0xff] %v622_v36  ;;  %v1433_v36 = vld [vmem:[%s1894_s2] ss:$0 sm:$0xff] }
 0x23f   : > { %v897_v17 = vld.sshfl [vmem:[#allocation1 + $0x20] sm:$0xff pattern:$0x73625140]  ;;  %901 = vst [vmem:[#allocation1 + $0x3] ss:$4 sm:$0xff] %v623_v38  ;;  %v383_v26 = vadd.f32 %v1433_v36, %v382_v33 }
 0x240   : > { %902 = vst [vmem:[#allocation1 + $0x20] ss:$4 sm:$0xff] %v624_v39 }
 0x241   : > { %903 = vst [vmem:[#allocation1 + $0x21] ss:$4 sm:$0xff] %v625_v32  ;;  %v1809_v39 = vmax.f32 %v383_v26, 0.0 }
 0x242   : > { %904 = vst [vmem:[#allocation1 + $0x22] ss:$4 sm:$0xff] %v626_v15 }
 0x243   : > { %905 = vst [vmem:[#allocation1 + $0x23] ss:$4 sm:$0xff] %v627_v41  ;;  %v518_v15 = vrot.slane %v1809_v39, 1  ;;  %v519_v41 = vrot.slane %v1809_v39, 2  ;;  %v523_v24 = vrot.slane %v1809_v39, 6 }
 0x245   : > { %v645_v42 = vperm.slane %v518_v15, 0  ;;  %v646_v46 = vperm.slane %v519_v41, 0  ;;  %v650_v55 = vperm.slane %v523_v24, 0 }
 0x246   : > { %v906_v6 = vld.sshfl [vmem:[#allocation1] sm:$0xff pattern:$0x73625140] }
 0x247   : > { %908 = vst [vmem:[#allocation1] ss:$4 sm:$0xff] %v628_v62 }
 0x248   : > { %909 = vst [vmem:[#allocation1 + $0x1] ss:$4 sm:$0xff] %v629_v60 }
 0x249   : > { %910 = vst [vmem:[#allocation1 + $0x2] ss:$4 sm:$0xff] %v630_v1 }
 0x24a   : > { %v907_v52 = vld.sshfl [vmem:[#allocation1 + $0x20] sm:$0xff pattern:$0x73625140]  ;;  %911 = vst [vmem:[#allocation1 + $0x3] ss:$4 sm:$0xff] %v631_v5 }
 0x24b   : > { %1355 = vmatpush.xpose.msk.msra.mxu3 %vm988_vm2, %v907_v52  ;;  %912 = vst [vmem:[#allocation1 + $0x20] ss:$4 sm:$0xff] %v632_v8 }
 0x24c   : > { %913 = vst [vmem:[#allocation1 + $0x21] ss:$4 sm:$0xff] %v633_v2 }
 0x24d   : > { %914 = vst [vmem:[#allocation1 + $0x22] ss:$4 sm:$0xff] %v634_v53 }
 0x24e   : > { %915 = vst [vmem:[#allocation1 + $0x23] ss:$4 sm:$0xff] %v635_v12 }
 0x24f   : > { %1356 = vmatpush.xpose.msk.msra.mxu3 %vm988_vm2, %v906_v6 }
 0x251   : > { %v1785_v22 = vld.sshfl [vmem:[#allocation1] sm:$0xff pattern:$0x73625140] }
 0x252   : > { %918 = vst [vmem:[#allocation1] ss:$4 sm:$0xff] %v636_v18 }
 0x253   : > { %1357 = vmatpush.xpose.msk.msra.mxu3 %vm988_vm2, %v897_v17  ;;  %919 = vst [vmem:[#allocation1 + $0x1] ss:$4 sm:$0xff] %v637_v14  ;;  %v524_v17 = vrot.slane %v1809_v39, 7 }
 0x254   : > { %920 = vst [vmem:[#allocation1 + $0x2] ss:$4 sm:$0xff] %v638_v19 }
 0x255   : > { %v1788_v35 = vld.sshfl [vmem:[#allocation1 + $0x20] sm:$0xff pattern:$0x73625140]  ;;  %921 = vst [vmem:[#allocation1 + $0x3] ss:$4 sm:$0xff] %v639_v20  ;;  %v651_v56 = vperm.slane %v524_v17, 0 }
 0x256   : > { %922 = vst [vmem:[#allocation1 + $0x20] ss:$4 sm:$0xff] %v640_v23 }
 0x257   : > { %1358 = vmatpush.xpose.msk.msra.mxu3 %vm988_vm2, %v1770_v44  ;;  %923 = vst [vmem:[#allocation1 + $0x21] ss:$4 sm:$0xff] %v641_v25  ;;  %v644_v44 = vperm.slane %v1809_v39, 0 }
 0x258   : > { %924 = vst [vmem:[#allocation1 + $0x22] ss:$4 sm:$0xff] %v642_v29 }
 0x259   : > { %925 = vst [vmem:[#allocation1 + $0x23] ss:$4 sm:$0xff] %v643_v30 }
 0x25b   : > { %1359 = vmatpush.xpose.msk.msra.mxu3 %vm988_vm2, %v1767_v27 }
 0x25c   : > { %v1794_v31 = vld.sshfl [vmem:[#allocation1] sm:$0xff pattern:$0x73625140] }
 0x25d   : > { %928 = vst [vmem:[#allocation1] ss:$4 sm:$0xff] %v628_v62 }
 0x25e   : > { %929 = vst [vmem:[#allocation1 + $0x1] ss:$4 sm:$0xff] %v629_v60 }
 0x25f   : > { %1360 = vmatpush.xpose.msk.msra.mxu3 %vm988_vm2, %v1765_v28  ;;  %930 = vst [vmem:[#allocation1 + $0x2] ss:$4 sm:$0xff] %v630_v1  ;;  %v521_v28 = vrot.slane %v1809_v39, 4 }
 0x260   : > { %v1798_v34 = vld.sshfl [vmem:[#allocation1 + $0x20] sm:$0xff pattern:$0x73625140]  ;;  %931 = vst [vmem:[#allocation1 + $0x3] ss:$4 sm:$0xff] %v631_v5 }
 0x261   : > { %932 = vst [vmem:[#allocation1 + $0x20] ss:$4 sm:$0xff] %v632_v8  ;;  %v648_v49 = vperm.slane %v521_v28, 0 }
 0x262   : > { %933 = vst [vmem:[#allocation1 + $0x21] ss:$4 sm:$0xff] %v633_v2 }
 0x263   : > { %1361 = vmatpush.xpose.msk.msra.mxu3 %vm988_vm2, %v1759_v40  ;;  %934 = vst [vmem:[#allocation1 + $0x22] ss:$4 sm:$0xff] %v634_v53  ;;  %v385_v40 = vpop.f32.mrf.mxu0 }
 0x264   : > { %935 = vst [vmem:[#allocation1 + $0x23] ss:$4 sm:$0xff] %v635_v12  ;;  %v386_v27 = vadd.f32 %v1433_v36, %v385_v40 }
 0x266   : > { %v403_v7 = vmax.f32 %v386_v27, 0.0 }
 0x267   : > { %1362 = vmatpush.xpose.msk.msra.mxu3 %vm988_vm2, %v1755_v37  ;;  %v1807_v38 = vld.sshfl [vmem:[#allocation1] sm:$0xff pattern:$0x73625140]  ;;  %v520_v37 = vrot.slane %v1809_v39, 3 }
 0x268   : > { %938 = vst [vmem:[#allocation1] ss:$4 sm:$0xff] %v636_v18  ;;  %v525_v60 = vrot.slane %v403_v7, 1  ;;  %v526_v61 = vrot.slane %v403_v7, 2  ;;  %v527_v62 = vrot.slane %v403_v7, 3  ;;  %v528_v1 = vrot.slane %v403_v7, 4 }
 0x269   : > { %939 = vst [vmem:[#allocation1 + $0x1] ss:$4 sm:$0xff] %v637_v14  ;;  %v647_v47 = vperm.slane %v520_v37, 0  ;;  %v530_v5 = vrot.slane %v403_v7, 6  ;;  %v652_v6 = vperm.slane %v403_v7, 0  ;;  %v531_v9 = vrot.slane %v403_v7, 7 }
 0x26a   : > { %940 = vst [vmem:[#allocation1 + $0x2] ss:$4 sm:$0xff] %v638_v19  ;;  %v653_v3 = vperm.slane %v525_v60, 0  ;;  %v654_v8 = vperm.slane %v526_v61, 0  ;;  %v655_v2 = vperm.slane %v527_v62, 0  ;;  %v656_v12 = vperm.slane %v528_v1, 0 }
 0x26b   : > { %1363 = vmatpush.xpose.msk.msra.mxu3 %vm988_vm2, %v1749_v21  ;;  %v1813_v32 = vld.sshfl [vmem:[#allocation1 + $0x20] sm:$0xff pattern:$0x73625140]  ;;  %941 = vst [vmem:[#allocation1 + $0x3] ss:$4 sm:$0xff] %v639_v20  ;;  %v522_v21 = vrot.slane %v1809_v39, 5 }
 0x26c   : > { %942 = vst [vmem:[#allocation1 + $0x20] ss:$4 sm:$0xff] %v640_v23  ;;  %v658_v52 = vperm.slane %v530_v5, 0  ;;  %v659_v54 = vperm.slane %v531_v9, 0 }
 0x26d   : > { %943 = vst [vmem:[#allocation1 + $0x21] ss:$4 sm:$0xff] %v641_v25 }
 0x26e   : > { %944 = vst [vmem:[#allocation1 + $0x22] ss:$4 sm:$0xff] %v642_v29 }
 0x26f   : > { %1364 = vmatpush.xpose.msk.msra.mxu3 %vm988_vm2, %v1744_v43  ;;  %945 = vst [vmem:[#allocation1 + $0x23] ss:$4 sm:$0xff] %v643_v30  ;;  %v649_v43 = vperm.slane %v522_v21, 0 }
 0x272   : > { %v1825_v48 = vld.sshfl [vmem:[#allocation1] sm:$0xff pattern:$0x73625140] }
 0x273   : > { %1365 = vmatpush.xpose.msk.msra.mxu3 %vm988_vm2, %v1730_v57  ;;  %948 = vst [vmem:[#allocation1] ss:$4 sm:$0xff] %v644_v44  ;;  %v529_v57 = vrot.slane %v403_v7, 5 }
 0x274   : > { %949 = vst [vmem:[#allocation1 + $0x1] ss:$4 sm:$0xff] %v645_v42 }
 0x275   : > { %950 = vst [vmem:[#allocation1 + $0x2] ss:$4 sm:$0xff] %v646_v46 }
 0x276   : > { %v1829_v58 = vld.sshfl [vmem:[#allocation1 + $0x20] sm:$0xff pattern:$0x73625140]  ;;  %951 = vst [vmem:[#allocation1 + $0x3] ss:$4 sm:$0xff] %v647_v47 }
 0x277   : > { %1366 = vmatpush.xpose.msk.msra.mxu3 %vm988_vm2, %v1724_v4  ;;  %952 = vst [vmem:[#allocation1 + $0x20] ss:$4 sm:$0xff] %v648_v49  ;;  %v657_v4 = vperm.slane %v529_v57, 0 }
 0x278   : > { %953 = vst [vmem:[#allocation1 + $0x21] ss:$4 sm:$0xff] %v649_v43 }
 0x279   : > { %954 = vst [vmem:[#allocation1 + $0x22] ss:$4 sm:$0xff] %v650_v55 }
 0x27a   : > { %955 = vst [vmem:[#allocation1 + $0x23] ss:$4 sm:$0xff] %v651_v56 }
 0x27b   : > { %1367 = vmatpush.xpose.msk.msra.mxu3 %vm988_vm2, %v1719_v0 }
 0x27d   : > { %v956_v53 = vld.sshfl [vmem:[#allocation1] sm:$0xff pattern:$0x73625140] }
 0x27e   : > { %958 = vst [vmem:[#allocation1] ss:$4 sm:$0xff] %v652_v6 }
 0x27f   : > { %1368 = vmatpush.xpose.msk.msra.mxu3 %vm988_vm2, %v1715_v63  ;;  %959 = vst [vmem:[#allocation1 + $0x1] ss:$4 sm:$0xff] %v653_v3 }
 0x280   : > { %960 = vst [vmem:[#allocation1 + $0x2] ss:$4 sm:$0xff] %v654_v8 }
 0x281   : > { %v957_v10 = vld.sshfl [vmem:[#allocation1 + $0x20] sm:$0xff pattern:$0x73625140]  ;;  %961 = vst [vmem:[#allocation1 + $0x3] ss:$4 sm:$0xff] %v655_v2 }
 0x282   : > { %962 = vst [vmem:[#allocation1 + $0x20] ss:$4 sm:$0xff] %v656_v12 }
 0x283   : > { %1369 = vmatpush.xpose.msk.msra.mxu3 %vm988_vm2, %v1709_v59  ;;  %963 = vst [vmem:[#allocation1 + $0x21] ss:$4 sm:$0xff] %v657_v4 }
 0x284   : > { %964 = vst [vmem:[#allocation1 + $0x22] ss:$4 sm:$0xff] %v658_v52 }
 0x285   : > { %965 = vst [vmem:[#allocation1 + $0x23] ss:$4 sm:$0xff] %v659_v54 }
 0x287   : > { %1370 = vmatpush.xpose.msk.msra.mxu3 %vm988_vm2, %v1706_v51 }
 0x288   : > { %v966_v0 = vld.sshfl [vmem:[#allocation1] sm:$0xff pattern:$0x73625140] }
 0x289   : > { %968 = vst [vmem:[#allocation1] ss:$4 sm:$0xff] %v644_v44 }
 0x28a   : > { %969 = vst [vmem:[#allocation1 + $0x1] ss:$4 sm:$0xff] %v645_v42  ;;  %1371 = vmatmul.msk.f32.vlgmr.msra.gmra.mxu3 %vm988_vm2, %v660_v13 }
 0x28b   : > { %970 = vst [vmem:[#allocation1 + $0x2] ss:$4 sm:$0xff] %v646_v46 }
 0x28c   : > { %v967_v63 = vld.sshfl [vmem:[#allocation1 + $0x20] sm:$0xff pattern:$0x73625140]  ;;  %971 = vst [vmem:[#allocation1 + $0x3] ss:$4 sm:$0xff] %v647_v47 }
 0x28d   : > { %972 = vst [vmem:[#allocation1 + $0x20] ss:$4 sm:$0xff] %v648_v49 }
 0x28e   : > { %973 = vst [vmem:[#allocation1 + $0x21] ss:$4 sm:$0xff] %v649_v43 }
 0x28f   : > { %974 = vst [vmem:[#allocation1 + $0x22] ss:$4 sm:$0xff] %v650_v55 }
 0x290   : > { %975 = vst [vmem:[#allocation1 + $0x23] ss:$4 sm:$0xff] %v651_v56 }
 0x293   : > { %v976_v50 = vld.sshfl [vmem:[#allocation1] sm:$0xff pattern:$0x73625140] }
 0x294   : > { %978 = vst [vmem:[#allocation1] ss:$4 sm:$0xff] %v652_v6 }
 0x295   : > { %979 = vst [vmem:[#allocation1 + $0x1] ss:$4 sm:$0xff] %v653_v3 }
 0x296   : > { %980 = vst [vmem:[#allocation1 + $0x2] ss:$4 sm:$0xff] %v654_v8 }
 0x297   : > { %v977_v59 = vld.sshfl [vmem:[#allocation1 + $0x20] sm:$0xff pattern:$0x73625140]  ;;  %981 = vst [vmem:[#allocation1 + $0x3] ss:$4 sm:$0xff] %v655_v2 }
 0x298   : > { %982 = vst [vmem:[#allocation1 + $0x20] ss:$4 sm:$0xff] %v656_v12 }
 0x299   : > { %983 = vst [vmem:[#allocation1 + $0x21] ss:$4 sm:$0xff] %v657_v4 }
 0x29a   : > { %984 = vst [vmem:[#allocation1 + $0x22] ss:$4 sm:$0xff] %v658_v52 }
 0x29b   : > { %985 = vst [vmem:[#allocation1 + $0x23] ss:$4 sm:$0xff] %v659_v54 }
 0x29e   : > { %v986_v11 = vld.sshfl [vmem:[#allocation1] sm:$0xff pattern:$0x73625140] }
 0x2a2   : > { %v987_v51 = vld.sshfl [vmem:[#allocation1 + $0x20] sm:$0xff pattern:$0x73625140] }
 0x2a3   : > { %1372 = vmatpush.xpose.msk.msrb.mxu1 %vm988_vm2, %v987_v51 }
 0x2a7   : > { %1373 = vmatpush.xpose.msk.msrb.mxu1 %vm988_vm2, %v986_v11 }
 0x2ab   : > { %1374 = vmatpush.xpose.msk.msrb.mxu1 %vm988_vm2, %v977_v59 }
 0x2af   : > { %1375 = vmatpush.xpose.msk.msrb.mxu1 %vm988_vm2, %v976_v50 }
 0x2b3   : > { %1376 = vmatpush.xpose.msk.msrb.mxu1 %vm988_vm2, %v967_v63 }
 0x2b4   : > { %v1137_v14 = vpop.f32.mrf.mxu1 }
 0x2b5   : > { %1200 = vst [vmem:[%s230_s24] sm:$0xff] %v1137_v14 }
 0x2b7   : > { %1377 = vmatpush.xpose.msk.msrb.mxu1 %vm988_vm2, %v966_v0 }
 0x2ba   : > { %v1157_v16 = vpop.f32.mrf.mxu2 }
 0x2bb   : > { %1378 = vmatpush.xpose.msk.msrb.mxu1 %vm988_vm2, %v957_v10  ;;  %1201 = vst [vmem:[%s230_s24 + $0x8] sm:$0xff] %v1157_v16 }
 0x2bf   : > { %1379 = vmatpush.xpose.msk.msrb.mxu1 %vm988_vm2, %v956_v53 }
 0x2c3   : > { %1380 = vmatpush.xpose.msk.msrb.mxu1 %vm988_vm2, %v1829_v58 }
 0x2c7   : > { %1381 = vmatpush.xpose.msk.msrb.mxu1 %vm988_vm2, %v1825_v48 }
 0x2cb   : > { %1382 = vmatpush.xpose.msk.msrb.mxu1 %vm988_vm2, %v1813_v32 }
 0x2cf   : > { %1383 = vmatpush.xpose.msk.msrb.mxu1 %vm988_vm2, %v1807_v38 }
 0x2d3   : > { %1384 = vmatpush.xpose.msk.msrb.mxu1 %vm988_vm2, %v1798_v34 }
 0x2d7   : > { %1385 = vmatpush.xpose.msk.msrb.mxu1 %vm988_vm2, %v1794_v31 }
 0x2db   : > { %1386 = vmatpush.xpose.msk.msrb.mxu1 %vm988_vm2, %v1788_v35 }
 0x2df   : > { %1387 = vmatpush.xpose.msk.msrb.mxu1 %vm988_vm2, %v1785_v22 }
 0x2e2   : > { %1388 = vmatmul.msk.f32.vlgmr.msrb.gmra.mxu1 %vm988_vm2, %v660_v13 }
 0x30d   : > { %v1177_v18 = vpop.f32.mrf.mxu3 }
 0x30e   : > { %1202 = vst [vmem:[%s230_s24 + $0x10] sm:$0xff] %v1177_v18 }
 0x35f   : > { %v1197_v19 = vpop.f32.mrf.mxu1 }
 0x360   : > { %1203 = vst [vmem:[%s230_s24 + $0x18] sm:$0xff] %v1197_v19 }
 0x361 PF: > { %s14_s19 = sadd.s32 1, %s1472_s19   ;;  %s1897_s15 = smov %s1464_s17 }
 0x362   : > { %p11_p8 = scmp.ge.s32.totalorder %s14_s19, 6   ;;  %s1898_s16 = smov %s1468_s18 }
 0x363   : > { %s1899_s17 = smov %s1902_s20  ;;  %s1900_s18 = smov %s1906_s21 }
 0x364   :  { %13 = sbr.rel (!%p11_p8) target bundleno = 3 (0x3), region = 73 }

</bundles_post_ra>
